<compile_context>
chip_gen: v7x
topology: tpu7x:2x2x1
jax: 0.10.0
libtpu: 0.0.40
codegen_flags: <defaults>
</compile_context>

<pallas_src>
import functools
import numpy as np

import jax
import jax.numpy as jnp
from jax.experimental import pallas as pl
from jax.experimental.pallas import tpu as pltpu


# ------------------------------ VMEM budget ---------------------------------

_VMEM_LIMIT_CACHE = None


def VMEM_LIMIT():
    """Per-generation VMEM scope: ~100 MiB on 128-MiB parts, <=56 MiB on v7x."""
    global _VMEM_LIMIT_CACHE
    if _VMEM_LIMIT_CACHE is None:
        limit = 48 * 1024 * 1024
        try:
            info = pltpu.get_tpu_info()
            cap = getattr(info, "vmem_capacity_bytes", None)
            if cap is not None and cap > 0:
                if cap >= 96 * 1024 * 1024:
                    limit = 100 * 1024 * 1024          # v5e / v6e (128 MiB)
                else:
                    limit = min(cap - 8 * 1024 * 1024,  # v7x (64 MiB)
                                56 * 1024 * 1024)
        except Exception:
            pass
        _VMEM_LIMIT_CACHE = int(limit)
    return _VMEM_LIMIT_CACHE


# ------------------------------ small helpers ------------------------------

def _ceil_to(x, m):
    return ((x + m - 1) // m) * m


def _pick_tile(dim, max_tile, gran):
    """Return (tile, padded_dim): tile divides padded_dim, tile <= max_tile,
    tile is a multiple of `gran`, padding is minimal (only up to `gran`)."""
    dp = _ceil_to(dim, gran)
    if dp <= max_tile:
        return dp, dp
    t = (max_tile // gran) * gran
    while dp % t != 0:
        t -= gran
    return t, dp


def _pad2(a, rows, cols):
    r, c = a.shape
    if r == rows and c == cols:
        return a
    return jnp.pad(a, ((0, rows - r), (0, cols - c)))


def _gelu(x):
    # tanh-form GELU (identical to the original google-research BERT gelu);
    # tanh lowers to the EUP slot -> much cheaper epilogue than the erf poly.
    return 0.5 * x * (1.0 + jnp.tanh(0.7978845608028654
                                     * (x + 0.044715 * x * x * x)))


# ----------------------------- Pallas kernels ------------------------------

def _linear_kernel(act, x_ref, w_ref, b_ref, o_ref, acc_ref):
    """o = act(x @ w + b), K-tiled accumulation in f32 VMEM scratch."""
    ks = pl.program_id(2)

    @pl.when(ks == 0)
    def _init():
        acc_ref[...] = jnp.zeros_like(acc_ref)

    acc_ref[...] += jnp.dot(x_ref[...], w_ref[...],
                            preferred_element_type=jnp.float32)

    @pl.when(ks == pl.num_programs(2) - 1)
    def _fin():
        y = acc_ref[...] + b_ref[...]
        if act == "gelu":
            y = _gelu(y)
        elif act == "tanh":
            y = jnp.tanh(y)
        o_ref[...] = y.astype(o_ref.dtype)


def pallas_linear(x, w, b, act=None, out_dtype=jnp.bfloat16,
                  tm=1024, tk=1024, tn=1024):
    """Tiled, pipelined y = act(x @ w + b) with bf16 MXU + f32 accumulation.
    tm/tk/tn are tile *targets*; actual tiles are divisors of the padded dims
    (no zero-pad MXU work for BERT sizes 768/2304/3072)."""
    M, K = x.shape
    K2, N = w.shape
    assert K == K2
    tm_e, Mp = _pick_tile(M, tm, 8)
    tk_e, Kp = _pick_tile(K, tk, 128)
    tn_e, Np = _pick_tile(N, tn, 128)   # N<128 pads to a lane-dense 128

    x_p = _pad2(x.astype(jnp.bfloat16), Mp, Kp)
    w_p = _pad2(w.astype(jnp.bfloat16), Kp, Np)
    b_p = _pad2(b.reshape(1, N).astype(jnp.float32), 1, Np)

    out = pl.pallas_call(
        functools.partial(_linear_kernel, act),
        out_shape=jax.ShapeDtypeStruct((Mp, Np), out_dtype),
        grid_spec=pltpu.PrefetchScalarGridSpec(
            num_scalar_prefetch=0,
            grid=(Mp // tm_e, Np // tn_e, Kp // tk_e),
            in_specs=[
                pl.BlockSpec((tm_e, tk_e), lambda i, j, s: (i, s)),
                pl.BlockSpec((tk_e, tn_e), lambda i, j, s: (s, j)),
                pl.BlockSpec((1, tn_e), lambda i, j, s: (0, j)),
            ],
            out_specs=pl.BlockSpec((tm_e, tn_e), lambda i, j, s: (i, j)),
            scratch_shapes=[pltpu.VMEM((tm_e, tn_e), jnp.float32)],
        ),
        compiler_params=pltpu.CompilerParams(
            dimension_semantics=("parallel", "parallel", "arbitrary"),
            vmem_limit_bytes=VMEM_LIMIT()),
    )(x_p, w_p, b_p)
    if Mp != M or Np != N:
        out = out[:M, :N]
    return out


def _linear_add_ln_kernel(x_ref, w_ref, b_ref, r_ref, g_ref, bt_ref,
                          o_ref, acc_ref):
    """o = LayerNorm(x @ w + b + residual); N untiled so the whole row lives
    in the f32 accumulator for the LN epilogue."""
    ks = pl.program_id(1)

    @pl.when(ks == 0)
    def _init():
        acc_ref[...] = jnp.zeros_like(acc_ref)

    acc_ref[...] += jnp.dot(x_ref[...], w_ref[...],
                            preferred_element_type=jnp.float32)

    @pl.when(ks == pl.num_programs(1) - 1)
    def _fin():
        y = acc_ref[...] + b_ref[...] + r_ref[...].astype(jnp.float32)
        mu = jnp.mean(y, axis=-1, keepdims=True)
        d = y - mu
        var = jnp.mean(d * d, axis=-1, keepdims=True)
        o_ref[...] = (d * jax.lax.rsqrt(var + 1e-12) * g_ref[...]
                      + bt_ref[...]).astype(o_ref.dtype)


def pallas_linear_add_layernorm(x, w, b, residual, gamma, beta,
                                out_dtype=jnp.bfloat16, tm=1024, tk=1024):
    M, K = x.shape
    K2, H = w.shape
    assert K == K2 and residual.shape == (M, H)
    tm_e, Mp = _pick_tile(M, tm, 8)
    tk_e, Kp = _pick_tile(K, tk, 128)

    x_p = _pad2(x.astype(jnp.bfloat16), Mp, Kp)
    w_p = _pad2(w.astype(jnp.bfloat16), Kp, H)
    r_p = _pad2(residual.astype(jnp.bfloat16), Mp, H)
    b2 = b.reshape(1, H).astype(jnp.float32)
    g2 = gamma.reshape(1, H).astype(jnp.float32)
    bt2 = beta.reshape(1, H).astype(jnp.float32)

    out = pl.pallas_call(
        _linear_add_ln_kernel,
        out_shape=jax.ShapeDtypeStruct((Mp, H), out_dtype),
        grid_spec=pltpu.PrefetchScalarGridSpec(
            num_scalar_prefetch=0,
            grid=(Mp // tm_e, Kp // tk_e),
            in_specs=[
                pl.BlockSpec((tm_e, tk_e), lambda i, s: (i, s)),
                pl.BlockSpec((tk_e, H), lambda i, s: (s, 0)),
                pl.BlockSpec((1, H), lambda i, s: (0, 0)),
                pl.BlockSpec((tm_e, H), lambda i, s: (i, 0)),
                pl.BlockSpec((1, H), lambda i, s: (0, 0)),
                pl.BlockSpec((1, H), lambda i, s: (0, 0)),
            ],
            out_specs=pl.BlockSpec((tm_e, H), lambda i, s: (i, 0)),
            scratch_shapes=[pltpu.VMEM((tm_e, H), jnp.float32)],
        ),
        compiler_params=pltpu.CompilerParams(
            dimension_semantics=("parallel", "arbitrary"),
            vmem_limit_bytes=VMEM_LIMIT()),
    )(x_p, w_p, b2, r_p, g2, bt2)
    return out[:M] if Mp != M else out


def _ln_kernel(x_ref, g_ref, b_ref, o_ref):
    y = x_ref[...].astype(jnp.float32)
    mu = jnp.mean(y, axis=-1, keepdims=True)
    d = y - mu
    var = jnp.mean(d * d, axis=-1, keepdims=True)
    o_ref[...] = (d * jax.lax.rsqrt(var + 1e-12) * g_ref[...]
                  + b_ref[...]).astype(o_ref.dtype)


def pallas_layernorm(x, gamma, beta, out_dtype=jnp.bfloat16, tm=1024):
    M, H = x.shape
    tm_e, Mp = _pick_tile(M, tm, 8)
    x_p = _pad2(x, Mp, H)
    g2 = gamma.reshape(1, H).astype(jnp.float32)
    b2 = beta.reshape(1, H).astype(jnp.float32)
    out = pl.pallas_call(
        _ln_kernel,
        out_shape=jax.ShapeDtypeStruct((Mp, H), out_dtype),
        grid_spec=pltpu.PrefetchScalarGridSpec(
            num_scalar_prefetch=0,
            grid=(Mp // tm_e,),
            in_specs=[
                pl.BlockSpec((tm_e, H), lambda i: (i, 0)),
                pl.BlockSpec((1, H), lambda i: (0, 0)),
                pl.BlockSpec((1, H), lambda i: (0, 0)),
            ],
            out_specs=pl.BlockSpec((tm_e, H), lambda i: (i, 0)),
        ),
        compiler_params=pltpu.CompilerParams(
            dimension_semantics=("parallel",),
            vmem_limit_bytes=VMEM_LIMIT()),
    )(x_p, g2, b2)
    return out[:M] if Mp != M else out


def _attention_kernel(num_heads, head_dim, qkv_ref, mask_ref, o_ref):
    """All-heads attention for one batch element per grid step.

    qkv_ref: (1, S, 3H) bf16 laid out [Q | K | V] along the last axis with the
    1/sqrt(Dh) scale already folded into the Q weights.  mask_ref: (1, 1, S)
    additive key mask.  o_ref: (1, S, H) bf16 (lane-dense context, head-merged
    layout -> no XLA head transpose needed outside)."""
    H = num_heads * head_dim
    mask = mask_ref[0]                               # (1, S) broadcast over rows

    for h in range(num_heads):                       # static unroll over heads
        lo = h * head_dim
        hi = lo + head_dim
        q = qkv_ref[0, :, lo:hi]                     # (S, Dh) bf16 (pre-scaled)
        k = qkv_ref[0, :, H + lo:H + hi]             # (S, Dh) bf16
        v = qkv_ref[0, :, 2 * H + lo:2 * H + hi]     # (S, Dh) bf16

        s = jax.lax.dot_general(q, k, (((1,), (1,)), ((), ())),
                                preferred_element_type=jnp.float32)   # (S, S)
        s = s + mask
        m = jnp.max(s, axis=-1, keepdims=True)
        p = jnp.exp(s - m)
        l = jnp.sum(p, axis=-1, keepdims=True)
        ctx = jax.lax.dot_general(p.astype(v.dtype), v,
                                  (((1,), (0,)), ((), ())),
                                  preferred_element_type=jnp.float32)  # (S, Dh)
        ctx = ctx * pl.reciprocal(l, approx=True)
        o_ref[0, :, lo:hi] = ctx.astype(o_ref.dtype)


def pallas_attention(qkv, add_mask, num_heads):
    """qkv: (B, S, 3H) bf16 (fused QKV projection output, Q pre-scaled).
    add_mask: (B, 1, S) additive key mask (f32).
    Returns context in merged-head layout (B, S, H) bf16."""
    B, S, H3 = qkv.shape
    assert H3 % 3 == 0
    H = H3 // 3
    assert H % num_heads == 0
    Dh = H // num_heads

    return pl.pallas_call(
        functools.partial(_attention_kernel, num_heads, Dh),
        out_shape=jax.ShapeDtypeStruct((B, S, H), jnp.bfloat16),
        grid_spec=pltpu.PrefetchScalarGridSpec(
            num_scalar_prefetch=0,
            grid=(B,),
            in_specs=[
                pl.BlockSpec((1, S, H3), lambda b: (b, 0, 0)),
                pl.BlockSpec((1, 1, S), lambda b: (b, 0, 0)),
            ],
            out_specs=pl.BlockSpec((1, S, H), lambda b: (b, 0, 0)),
        ),
        compiler_params=pltpu.CompilerParams(
            dimension_semantics=("parallel",),
            vmem_limit_bytes=VMEM_LIMIT()),
    )(qkv.astype(jnp.bfloat16), add_mask.astype(jnp.float32))


# ------------------------- parameter initialization -------------------------

def init_params(key, cfg):
    H = cfg["hidden_size"]
    I = cfg["intermediate_size"]
    V = cfg["vocab_size"]
    P = cfg["max_position"]
    T = cfg["type_vocab_size"]
    L = cfg["num_layers"]
    C = cfg["num_labels"]

    def nrm(k, shape):
        return 0.02 * jax.random.normal(k, shape, dtype=jnp.float32)

    keys = iter(jax.random.split(key, 8 + 8 * L))
    params = {
        "word_emb": nrm(next(keys), (V, H)),
        "pos_emb": nrm(next(keys), (P, H)),
        "type_emb": nrm(next(keys), (T, H)),
        "emb_ln_g": jnp.ones((H,), jnp.float32),
        "emb_ln_b": jnp.zeros((H,), jnp.float32),
        "pool_w": nrm(next(keys), (H, H)),
        "pool_b": jnp.zeros((H,), jnp.float32),
        "cls_w": nrm(next(keys), (H, C)),       # SingleLinearClassifier
        "cls_b": jnp.zeros((C,), jnp.float32),
        "layers": [],
    }
    for _ in range(L):
        params["layers"].append({
            "wq": nrm(next(keys), (H, H)), "bq": jnp.zeros((H,), jnp.float32),
            "wk": nrm(next(keys), (H, H)), "bk": jnp.zeros((H,), jnp.float32),
            "wv": nrm(next(keys), (H, H)), "bv": jnp.zeros((H,), jnp.float32),
            "wo": nrm(next(keys), (H, H)), "bo": jnp.zeros((H,), jnp.float32),
            "ln1_g": jnp.ones((H,), jnp.float32), "ln1_b": jnp.zeros((H,), jnp.float32),
            "wi": nrm(next(keys), (H, I)), "bi": jnp.zeros((I,), jnp.float32),
            "wo2": nrm(next(keys), (I, H)), "bo2": jnp.zeros((H,), jnp.float32),
            "ln2_g": jnp.ones((H,), jnp.float32), "ln2_b": jnp.zeros((H,), jnp.float32),
        })
    return params


def prepare_params(params, cfg):
    """Fuse QKV weights (1/sqrt(Dh) folded into the Q part), pre-cast weights
    and embedding tables to bf16.  Biases / LN params stay f32."""
    H = cfg["hidden_size"]
    nH = cfg["num_heads"]
    Dh = H // nH
    scale = 1.0 / float(np.sqrt(Dh))
    fast = {
        "word_emb": params["word_emb"].astype(jnp.bfloat16),
        "pos_emb": params["pos_emb"].astype(jnp.bfloat16),
        "type_emb": params["type_emb"].astype(jnp.bfloat16),
        "emb_ln_g": params["emb_ln_g"], "emb_ln_b": params["emb_ln_b"],
        "pool_w": params["pool_w"].astype(jnp.bfloat16),
        "pool_b": params["pool_b"].astype(jnp.float32),
        "cls_w": params["cls_w"].astype(jnp.bfloat16),
        "cls_b": params["cls_b"].astype(jnp.float32),
        "layers": [],
    }
    for lp in params["layers"]:
        fast["layers"].append({
            "w_qkv": jnp.concatenate(
                [lp["wq"] * scale, lp["wk"], lp["wv"]], axis=1).astype(jnp.bfloat16),
            "b_qkv": jnp.concatenate(
                [lp["bq"] * scale, lp["bk"], lp["bv"]], axis=0).astype(jnp.float32),
            "wo": lp["wo"].astype(jnp.bfloat16), "bo": lp["bo"].astype(jnp.float32),
            "ln1_g": lp["ln1_g"], "ln1_b": lp["ln1_b"],
            "wi": lp["wi"].astype(jnp.bfloat16), "bi": lp["bi"].astype(jnp.float32),
            "wo2": lp["wo2"].astype(jnp.bfloat16), "bo2": lp["bo2"].astype(jnp.float32),
            "ln2_g": lp["ln2_g"], "ln2_b": lp["ln2_b"],
        })
    return fast


# --------------------------------- forward ---------------------------------

def bert_tagger_forward(params, cfg, input_ids, token_type_ids, attention_mask):
    """Returns (logits (B*S, num_labels) f32, pooled_output (B, H) f32)."""
    B, S = input_ids.shape
    H = cfg["hidden_size"]
    nH = cfg["num_heads"]

    # --- embeddings (gathers = XLA glue, bf16 tables), then Pallas LayerNorm
    pos_ids = jnp.arange(S, dtype=jnp.int32)[None, :]
    emb = (params["word_emb"][input_ids]
           + params["pos_emb"][pos_ids]
           + params["type_emb"][token_type_ids])                    # (B,S,H) bf16
    x = pallas_layernorm(emb.reshape(B * S, H),
                         params["emb_ln_g"], params["emb_ln_b"])    # (B*S,H) bf16

    # key-only additive mask, kept tiny: (B, 1, S)
    add_mask = ((1.0 - attention_mask.astype(jnp.float32)) * -10000.0
                ).reshape(B, 1, S)

    for lp in params["layers"]:
        # fused QKV projection: one (H, 3H) matmul, x read from HBM once
        qkv = pallas_linear(x, lp["w_qkv"], lp["b_qkv"])            # (B*S, 3H) bf16
        # attention reads (B,S,3H) directly and writes merged-head (B,S,H):
        # no XLA head split/merge transposes.
        ctx = pallas_attention(qkv.reshape(B, S, 3 * H), add_mask, nH)
        # output projection + residual + LayerNorm fused in one kernel
        x = pallas_linear_add_layernorm(ctx.reshape(B * S, H), lp["wo"], lp["bo"],
                                        x, lp["ln1_g"], lp["ln1_b"])
        # FFN: up-projection with GELU epilogue, down-projection fused with
        # residual + LayerNorm
        inter = pallas_linear(x, lp["wi"], lp["bi"], act="gelu")
        x = pallas_linear_add_layernorm(inter, lp["wo2"], lp["bo2"], x,
                                        lp["ln2_g"], lp["ln2_b"])

    sequence_output = x                                   # last_bert_layer.view(-1,H)
    first_tok = sequence_output.reshape(B, S, H)[:, 0, :]
    pooled = pallas_linear(first_tok, params["pool_w"], params["pool_b"],
                           act="tanh", out_dtype=jnp.float32)

    # dropout(hidden_dropout_prob) == identity at inference
    # classifier: N padded to 128 lanes inside pallas_linear, sliced back
    logits = pallas_linear(sequence_output, params["cls_w"], params["cls_b"],
                           out_dtype=jnp.float32)
    return logits, pooled


def masked_cross_entropy(logits, labels, attention_mask, char_mask=None):
    """labels-provided branch (use_crf=False): mean CE over active positions."""
    active = (attention_mask.reshape(-1) == 1)
    if char_mask is not None:
        active = active & char_mask.reshape(-1).astype(bool)
    logp = jax.nn.log_softmax(logits, axis=-1)
    nll = -jnp.take_along_axis(logp, labels.reshape(-1, 1), axis=-1)[:, 0]
    w = active.astype(jnp.float32)
    return jnp.sum(nll * w) / jnp.maximum(jnp.sum(w), 1.0)


def predict_labels(logits, char_mask, seq_len, num_labels):
    """labels=None / use_crf=False branch: numpy argmax + char_mask filtering."""
    lg = np.asarray(logits).reshape(-1, seq_len, num_labels)
    preds = np.argmax(lg, axis=-1)
    cm = np.asarray(char_mask).reshape(-1, seq_len).astype(bool)
    out = []
    for i in range(preds.shape[0]):
        out.append(preds[i][cm[i]].tolist())
    return out


# ----------------------------------- main -----------------------------------

if __name__ == "__main__":
    # ---- kernel self-checks (small max-tile args force multi-tile grids and
    #      exercise K accumulation / padding paths) ----
    ck = jax.random.split(jax.random.PRNGKey(1), 8)

    A = jax.random.normal(ck[0], (64, 256), jnp.float32).astype(jnp.bfloat16)
    W = jax.random.normal(ck[1], (256, 384), jnp.float32).astype(jnp.bfloat16)
    bb = jax.random.normal(ck[2], (384,), jnp.float32)
    got = pallas_linear(A, W, bb, out_dtype=jnp.float32, tm=32, tk=128, tn=128)
    ref = jnp.dot(A.astype(jnp.float32), W.astype(jnp.float32),
                  precision=jax.lax.Precision.HIGHEST) + bb
    np.testing.assert_allclose(np.asarray(got), np.asarray(ref),
                               rtol=2e-2, atol=2e-2)

    W2 = jax.random.normal(ck[3], (256, 128), jnp.float32).astype(jnp.bfloat16)
    R = jax.random.normal(ck[4], (64, 128), jnp.float32).astype(jnp.bfloat16)
    g = 1.0 + 0.1 * jax.random.normal(ck[5], (128,), jnp.float32)
    bt = 0.1 * jax.random.normal(ck[6], (128,), jnp.float32)
    got2 = pallas_linear_add_layernorm(A, W2, bb[:128], R, g, bt,
                                       out_dtype=jnp.float32, tm=32, tk=128)
    y = (jnp.dot(A.astype(jnp.float32), W2.astype(jnp.float32),
                 precision=jax.lax.Precision.HIGHEST) + bb[:128]
         + R.astype(jnp.float32))
    mu = y.mean(-1, keepdims=True)
    var = ((y - mu) ** 2).mean(-1, keepdims=True)
    ref2 = (y - mu) * jax.lax.rsqrt(var + 1e-12) * g + bt
    np.testing.assert_allclose(np.asarray(got2), np.asarray(ref2),
                               rtol=5e-2, atol=5e-2)

    # attention check: B=2, S=16, H=128, nH=2 (Dh=64)
    qkv_t = (0.5 * jax.random.normal(ck[7], (2, 16, 384), jnp.float32)
             ).astype(jnp.bfloat16)
    am = jnp.ones((2, 16), jnp.float32).at[1, 12:].set(0.0)
    addm = ((1.0 - am) * -10000.0).reshape(2, 1, 16)
    got3 = pallas_attention(qkv_t, addm, num_heads=2).astype(jnp.float32)
    qkv_f = qkv_t.astype(jnp.float32)
    qf = qkv_f[..., 0:128].reshape(2, 16, 2, 64).transpose(0, 2, 1, 3)
    kf = qkv_f[..., 128:256].reshape(2, 16, 2, 64).transpose(0, 2, 1, 3)
    vf = qkv_f[..., 256:384].reshape(2, 16, 2, 64).transpose(0, 2, 1, 3)
    s = jnp.einsum("bhqd,bhkd->bhqk", qf, kf) + addm[:, :, None, :]
    ref3 = jnp.einsum("bhqk,bhkd->bhqd", jax.nn.softmax(s, axis=-1), vf)
    ref3 = ref3.transpose(0, 2, 1, 3).reshape(2, 16, 128)
    np.testing.assert_allclose(np.asarray(got3), np.asarray(ref3),
                               rtol=2e-2, atol=2e-2)

    # ---- BertTagger toy forward ----
    cfg = dict(
        vocab_size=100,
        hidden_size=128,
        num_heads=2,
        num_layers=2,
        intermediate_size=256,
        max_position=64,
        type_vocab_size=2,
        num_labels=4,
    )
    B, S = 2, 16

    root = jax.random.PRNGKey(0)
    k_par, k_ids, k_lab = jax.random.split(root, 3)
    params = init_params(k_par, cfg)
    fast = prepare_params(params, cfg)

    input_ids = jax.random.randint(k_ids, (B, S), 0, cfg["vocab_size"], dtype=jnp.int32)
    token_type_ids = jnp.zeros((B, S), jnp.int32)
    attention_mask = jnp.ones((B, S), jnp.int32).at[1, 12:].set(0)   # pad tail of row 1
    char_mask = jnp.ones((B, S), jnp.int32).at[0, 14:].set(0).at[1, 12:].set(0)
    labels = jax.random.randint(k_lab, (B, S), 0, cfg["num_labels"], dtype=jnp.int32)

    fwd = jax.jit(lambda p, ii, tt, am2: bert_tagger_forward(p, cfg, ii, tt, am2))
    logits, pooled = fwd(fast, input_ids, token_type_ids, attention_mask)
    logits = jax.block_until_ready(logits)
    pooled = jax.block_until_ready(pooled)
    assert logits.shape == (B * S, cfg["num_labels"])
    assert pooled.shape == (B, cfg["hidden_size"])
    assert np.all(np.isfinite(np.asarray(logits)))

    # branch 1: labels=None, use_crf=False -> list of predicted label sequences
    pred = predict_labels(logits, char_mask, S, cfg["num_labels"])
    assert len(pred) == B

    # branch 2: labels given, use_crf=False -> masked cross-entropy loss
    loss = jax.block_until_ready(
        masked_cross_entropy(logits, labels, attention_mask, char_mask))
    assert np.isfinite(float(loss))

    print("KERNEL_OK")
</pallas_src>

<mosaic_0001>
module attributes {stable_mosaic.version = 11 : i64} {
  func.func @_linear_kernel(%arg0: i32, %arg1: i32, %arg2: i32, %arg3: memref<32x128xbf16, #tpu.memory_space<vmem>>, %arg4: memref<128x128xbf16, #tpu.memory_space<vmem>>, %arg5: memref<1x128xf32, #tpu.memory_space<vmem>>, %arg6: memref<32x128xf32, #tpu.memory_space<vmem>>, %arg7: memref<32x128xf32, #tpu.memory_space<vmem>>) attributes {dimension_semantics = [#tpu.dimension_semantics<parallel>, #tpu.dimension_semantics<parallel>, #tpu.dimension_semantics<arbitrary>], iteration_bounds = array<i64: 2, 3, 2>, scalar_prefetch = 0 : i64, scratch_operands = 1 : i64, tpu.core_type = #tpu.core_type<tc>, window_params = [{transform_indices = @transform_0, window_bounds = array<i64: 32, 128>}, {transform_indices = @transform_1, window_bounds = array<i64: 128, 128>}, {transform_indices = @transform_2, window_bounds = array<i64: 1, 128>}, {transform_indices = @transform_3, window_bounds = array<i64: 32, 128>}]} {
    %c0_i32 = arith.constant 0 : i32
    %0 = arith.cmpi eq, %arg2, %c0_i32 : i32
    %1 = arith.extui %0 : i1 to i32
    %c0_i32_0 = arith.constant 0 : i32
    %2 = arith.cmpi ne, %1, %c0_i32_0 : i32
    scf.if %2 {
      %cst_9 = arith.constant 0.000000e+00 : f32
      %12 = vector.broadcast %cst_9 : f32 to vector<32x128xf32>
      %c0_10 = arith.constant 0 : index
      %c0_11 = arith.constant 0 : index
      %13 = vector.load %arg7[%c0_10, %c0_11] : memref<32x128xf32, #tpu.memory_space<vmem>>, vector<32x128xf32>
      tpu.vector_store %arg7[%c0_10, %c0_11], %12 {strides = array<i32>} : memref<32x128xf32, #tpu.memory_space<vmem>>, vector<32x128xf32>,
    } else {
    }
    %c0 = arith.constant 0 : index
    %c0_1 = arith.constant 0 : index
    %3 = vector.load %arg7[%c0, %c0_1] : memref<32x128xf32, #tpu.memory_space<vmem>>, vector<32x128xf32>
    %c0_2 = arith.constant 0 : index
    %c0_3 = arith.constant 0 : index
    %4 = vector.load %arg3[%c0_2, %c0_3] : memref<32x128xbf16, #tpu.memory_space<vmem>>, vector<32x128xbf16>
    %c0_4 = arith.constant 0 : index
    %c0_5 = arith.constant 0 : index
    %5 = vector.load %arg4[%c0_4, %c0_5] : memref<128x128xbf16, #tpu.memory_space<vmem>>, vector<128x128xbf16>
    %cst = arith.constant dense<0.000000e+00> : vector<32x128xf32>
    %6 = tpu.matmul %4, %5, %cst {dimension_numbers = #tpu.dot_dimension_numbers<[1], [0], [0], [1], [0, 0, 1, 1], [], []>} : vector<32x128xbf16>, vector<128x128xbf16>, vector<32x128xf32> -> vector<32x128xf32>
    %7 = arith.addf %3, %6 : vector<32x128xf32>
    %c0_6 = arith.constant 0 : index
    %c0_7 = arith.constant 0 : index
    %8 = vector.load %arg7[%c0_6, %c0_7] : memref<32x128xf32, #tpu.memory_space<vmem>>, vector<32x128xf32>
    tpu.vector_store %arg7[%c0_6, %c0_7], %7 {strides = array<i32>} : memref<32x128xf32, #tpu.memory_space<vmem>>, vector<32x128xf32>,
    %c1_i32 = arith.constant 1 : i32
    %9 = arith.cmpi eq, %arg2, %c1_i32 : i32
    %10 = arith.extui %9 : i1 to i32
    %c0_i32_8 = arith.constant 0 : i32
    %11 = arith.cmpi ne, %10, %c0_i32_8 : i32
    scf.if %11 {
      %c0_9 = arith.constant 0 : index
      %c0_10 = arith.constant 0 : index
      %12 = vector.load %arg7[%c0_9, %c0_10] : memref<32x128xf32, #tpu.memory_space<vmem>>, vector<32x128xf32>
      %c0_11 = arith.constant 0 : index
      %c0_12 = arith.constant 0 : index
      %13 = vector.load %arg5[%c0_11, %c0_12] : memref<1x128xf32, #tpu.memory_space<vmem>>, vector<1x128xf32>
      %14 = vector.broadcast %13 : vector<1x128xf32> to vector<32x128xf32>
      %15 = arith.addf %12, %14 : vector<32x128xf32>
      %c0_13 = arith.constant 0 : index
      %c0_14 = arith.constant 0 : index
      %16 = vector.load %arg6[%c0_13, %c0_14] : memref<32x128xf32, #tpu.memory_space<vmem>>, vector<32x128xf32>
      tpu.vector_store %arg6[%c0_13, %c0_14], %15 {strides = array<i32>} : memref<32x128xf32, #tpu.memory_space<vmem>>, vector<32x128xf32>,
    } else {
    }
    return
  }
  func.func @transform_0(%arg0: i32, %arg1: i32, %arg2: i32) -> (i32, i32) {
    %c0_i32 = arith.constant 0 : i32
    return %arg0, %arg2 : i32, i32
  }
  func.func @transform_1(%arg0: i32, %arg1: i32, %arg2: i32) -> (i32, i32) {
    %c0_i32 = arith.constant 0 : i32
    return %arg2, %arg1 : i32, i32
  }
  func.func @transform_2(%arg0: i32, %arg1: i32, %arg2: i32) -> (i32, i32) {
    %c0_i32 = arith.constant 0 : i32
    %c0_i32_0 = arith.constant 0 : i32
    return %c0_i32, %arg1 : i32, i32
  }
  func.func @transform_3(%arg0: i32, %arg1: i32, %arg2: i32) -> (i32, i32) {
    %c0_i32 = arith.constant 0 : i32
    return %arg0, %arg1 : i32, i32
  }
}

</mosaic_0001>

<bundles_post_ra>
// kernel: tpu_custom_call.1
= control target key start
LH: loop header
LB: loop body
LE: loop exit
PB: predicated region body
PF: predicated region fallthrough
CT: control target
= control target key end

     0   :  { %s1513_s0 = inlined_call_operand.hbm [shape: bf16[64,256], index: 0, kind: input, shape index: {}]   ;;  %s1514_s1 = inlined_call_operand.hbm [shape: bf16[256,384], index: 1, kind: input, shape index: {}]   ;;  %s1515_s2 = inlined_call_operand.vmem [shape: f32[1,384], index: 2, kind: input, shape index: {}]   ;;  %s1516_s3 = inlined_call_operand.hbm [shape: f32[64,384], index: 3, kind: output, shape index: {}]  }
   0x1   :  { %1534 = sst [smem:[#allocation20_spill]] %s1513_s0 }
   0x2   :  { %1535 = sst [smem:[#allocation21_spill]] %s1514_s1 }
   0x3   :  { %1536 = sst [smem:[#allocation22_spill]] %s1515_s2 }
   0x4   :  { %1537 = sst [smem:[#allocation23_spill]] %s1516_s3 }
   0x5   :  { %8 = vsyncpa [#allocation4], 0 }
   0x6   :  { %10 = vsyncpa [#allocation4 + $0x1], 0 }
   0x7   :  { %11 = vsyncpa [#allocation7], 0 }
   0x8   :  { %13 = vsyncpa [#allocation7 + $0x1], 0 }
   0x9   :  { %14 = vsyncpa [#allocation5], 0 }
   0xa   :  { %16 = vsyncpa [#allocation5 + $0x1], 0  ;;  %s1084_s12 = smov 0   ;;  %s1086_s13 = smov 0  }
   0xb   :  { %s1088_s14 = smov 0   ;;  %s1090_s15 = smov 0  }
   0xc   :  { %s1092_s16 = smov 0   ;;  %s1094_s17 = smov 0  }
   0xd   :  { %s1096_s18 = smov 0   ;;  %s1098_s19 = smov 0  }
   0xe   :  { %s1100_s20 = smov 0   ;;  %s1102_s21 = smov 0  }
   0xf   :  { %s1104_s22 = smov 0   ;;  %s1106_s23 = smov 0  }
  0x10   :  { %s1108_s24 = smov 0   ;;  %s1110_s25 = smov 0  }
  0x11   :  { %s1112_s26 = smov 0   ;;  %s1114_s27 = smov 0  }
  0x12 LB: > { %1538 = sst [smem:[#allocation12_spill]] %s1027_s21  ;;  %s592_s28 = sadd.s32 4294967295, %s1051_s27   ;;  %s1051_s27 = sphi %s1114_s27, %s22_s27   ;;  %s1047_s26 = sphi %s1112_s26, %s1602_s26   ;;  %s1043_s25 = sphi %s1110_s25, %s1601_s25   ;;  %s1039_s24 = sphi %s1108_s24, %s1600_s24   ;;  %s1035_s23 = sphi %s1106_s23, %s1599_s23   ;;  %s1031_s22 = sphi %s1104_s22, %s1598_s22   ;;  %s1027_s21 = sphi %s1102_s21, %s1597_s21   ;;  %s1023_s20 = sphi %s1100_s20, %s1596_s20   ;;  %s1019_s19 = sphi %s1098_s19, %s1595_s19   ;;  %s1015_s18 = sphi %s1096_s18, %s1594_s18   ;;  %s1011_s17 = sphi %s1094_s17, %s1593_s17   ;;  %s1007_s16 = sphi %s1092_s16, %s1592_s16   ;;  %s1003_s15 = sphi %s1090_s15, %s1591_s15   ;;  %s999_s14 = sphi %s1088_s14, %s1590_s14   ;;  %s995_s13 = sphi %s1086_s13, %s1589_s13   ;;  %s991_s12 = sphi %s1084_s12, %s1587_s12  }
  0x13   : > { %1539 = sst [smem:[#allocation13_spill]] %s1031_s22  ;;  %s34_s29 = sadd.s32 1, %s1039_s24 }
  0x14   : > { %1540 = sst [smem:[#allocation14_spill]] %s1035_s23  ;;  %p1164_p0 = scmp.ge.s32.totalorder %s34_s29, 2 }
  0x15   : > { %p57_p1 = scmp.ne.s32.totalorder %s1023_s20, %s1019_s19  ;;  %p1521_p2 = scmp.eq.s32.totalorder %s1051_s27, 0 }
  0x16   : > { %s1604_s29 = smov (%p1164_p0, %s34_s29), 0  ;;  %p63_p3 = scmp.ne.s32.totalorder %s1019_s19, %s1015_s18 }
  0x17   : > { %1542 = sst [smem:[#allocation15_spill]] %s1604_s29  ;;  %s1180_s6 = ssub.s32 %s1039_s24, %s1604_s29 }
  0x18   : > { %p1182_p4 = scmp.eq.s32.totalorder %s592_s28, 0  ;;  %p1188_p5 = por %p1521_p2, %p57_p1 }
  0x19   : > { %p1192_p6 = scmp.eq.s32.totalorder %s592_s28, 11  ;;  %p1520_p8 = scmp.lt.s32.totalorder %s1051_s27, 12 }
  0x1a   : > { %s1543_s7 = scalar_select %p1182_p4, 1, 0 }
  0x1b   : > { %s1545_s9 = scalar_select %p1192_p6, 1, 0 }
  0x1c   : > { %p1198_p7 = por %p1182_p4, %p63_p3  ;;  %s169_s11 = sand.u32 1, %s1023_s20  }
  0x1d   : > { %s596_s18 = sshll.u32 %s169_s11, 4  ;;  %s627_s5 = sshll.u32 %s1047_s26, 3 }
  0x1e   : > { %s1546_s10 = scalar_select %p1198_p7, 1, 0 }
  0x1f   : > { %s179_s4 = sadd.s32 %s1039_s24, %s627_s5  ;;  %s173_s29 = scalar_lea.vmem [#allocation3], %s596_s18 }
  0x20   : > { %s182_s3 = sshll.u32 %s173_s29, 4  ;;  %s599_s23 = sshll.u32 %s179_s4, 6  ;;  %s1206_s3 = int_to_ptr.vmem [resolvable:$true] %s182_s3 }
  0x21   : > { %s1547_s0 = sld [smem:[#allocation20_spill]]  ;;  %p1217_p9 = pnand %p1520_p8, %p1188_p5 }
  0x22   : > { %s1221_s29 = scalar_lea.sflag [#allocation4], %s169_s11 }
  0x23   : > { %p827_p11 = pneg %p1217_p9 }
  0x27   : > { %s1211_s2 = scalar_lea.hbm %s1547_s0, %s599_s23  ;;  %s830_s5 = scalar_lea.hbm %s1547_s0, 1024 }
  0x28   : > { %s825_s4 = scalar_lea.hbm %s1211_s2, 256  ;;  %p831_p1 = scmp.lt.u32.totalorder %s1211_s2, %s1547_s0 }
  0x29   : > { %p826_p10 = scmp.ne.s32.totalorder %s1211_s2, %s825_s4  ;;  %p832_p3 = scmp.lt.u32.totalorder %s830_s5, %s825_s4 }
  0x2a   : > { %p834_p8 = scmp.lt.u32.totalorder %s825_s4, %s1211_s2 }
  0x2b   : > { %p828_p12 = pnand %p827_p11, %p826_p10  ;;  %p833_p5 = por %p832_p3, %p831_p1 }
  0x2d   : > { %p829_p13 = pneg %p828_p12  ;;  %p835_p2 = por %p834_p8, %p833_p5 }
  0x2f   : > { %p836_p7 = pnand %p835_p2, %p829_p13 }
  0x31   : > { %839 = shalt.err (!%p836_p7)
}
  0x32   : > { %s840_s11 = scalar_lea.vmem %s1206_s3, 256  ;;  %s1053_s28 = smov [#allocation3]  }
  0x33   : > { %p841_p10 = scmp.ne.s32.totalorder %s1206_s3, %s840_s11  ;;  %s845_s21 = sshll.u32 %s1053_s28, 4  ;;  %s846_s21 = int_to_ptr.vmem [resolvable:$false] %s845_s21 }
  0x34   : > { %s847_s23 = scalar_lea.vmem %s846_s21, 512  ;;  %p848_p4 = scmp.lt.s32.totalorder %s1206_s3, %s846_s21 }
  0x35   : > { %p843_p12 = pnand %p841_p10, %p827_p11  ;;  %p849_p1 = scmp.lt.s32.totalorder %s847_s23, %s840_s11 }
  0x37   : > { %p844_p6 = pneg %p843_p12  ;;  %p850_p3 = por %p849_p1, %p848_p4 }
  0x39   : > { %p851_p8 = pnand %p850_p3, %p844_p6 }
  0x3b   : > { %854 = shalt.err (!%p851_p8)
}
  0x3c   : > { %s1054_s4 = smov 128   ;;  %s1524_s5 = smov 64  }
  0x3d   : > { %s1525_s8 = smov 4   ;;  %p604_p2 = scmp.ge.s32.totalorder %s1051_s27, 1 }
  0x3e   : > { %669 = dma.hbm_to_vmem [thread:$0]  (!%p1217_p9), %s1211_s2, 256, %s1206_s3, %s1221_s29, %s1054_s4, %s1524_s5, %s1525_s8  }
  0x3f   : > { %p219_p4 = scmp.lt.s32.totalorder %s1051_s27, 13  ;;  %s593_s11 = sadd.s32 4294967294, %s1051_s27  }
  0x40   : > { %s37_s28 = sadd.s32 1, %s1043_s25  ;;  %s78_s21 = sadd.s32 1, %s1011_s17 }
  0x41   : > { %p1253_p6 = pnand %p604_p2, %p219_p4  ;;  %s1606_s28 = smov (!%p1164_p0, %s37_s28), %s1043_s25 }
  0x42   : > { %p85_p7 = scmp.ne.s32.totalorder %s1011_s17, %s1007_s16  ;;  %p91_p9 = scmp.ne.s32.totalorder %s1007_s16, %s1003_s15 }
  0x43   : > { %p39_p11 = scmp.ge.s32.totalorder %s1606_s28, 3  ;;  %s132_s2 = sadd.s32 1, %s999_s14 }
  0x44   : > { %p1550_p13 = scmp.eq.s32.totalorder %s1051_s27, 0  ;;  %p1552_p10 = scmp.ne.s32.totalorder %s1543_s7, 0 }
  0x45   : > { %s1608_s28 = smov (%p39_p11, %s1606_s28), 0  ;;  %s1556_s30 = sadd.s32 1, %s1047_s26 }
  0x46   : > { %p1270_p5 = por %p85_p7, %p1550_p13  ;;  %p1276_p12 = por %p91_p9, %p1552_p10 }
  0x47   : > { %1555 = sst [smem:[#allocation17_spill]] %s1608_s28  ;;  %s1610_s30 = smov (!%p39_p11, %s1556_s30), %s1047_s26 }
  0x48   : > { %s1553_s22 = scalar_select %p1276_p12, 1, 0 }
  0x49   : > { %s74_s15 = ssub.s32 %s1043_s25, %s1608_s28  ;;  %p142_p0 = scmp.ne.s32.totalorder %s999_s14, %s995_s13 }
  0x4a   : > { %1554 = sst [smem:[#allocation16_spill]] %s1553_s22  ;;  %p43_p1 = scmp.ge.s32.totalorder %s1610_s30, 2 }
  0x4b   : > { %s75_s29 = sor.u32 %s74_s15, %s1180_s6  ;;  %p1557_p8 = scmp.ne.s32.totalorder %s1545_s9, 0 }
  0x4c   : > { %p76_p3 = scmp.eq.s32.totalorder %s75_s29, 0  ;;  %s1612_s30 = smov (%p43_p1, %s1610_s30), 0 }
  0x4d   : > { %p1292_p2 = por %p1557_p8, %p142_p0  ;;  %1560 = sst [smem:[#allocation19_spill]] %s1612_s30 }
  0x4e   : > { %s1299_s23 = scalar_select %p76_p3, %s1011_s17, %s78_s21  }
  0x4f   : > { %s1558_s7 = scalar_select %p1292_p2, 1, 0 }
  0x50   : > { %s45_s4 = ssub.s32 %s1047_s26, %s1612_s30  ;;  %p148_p4 = scmp.ne.s32.totalorder %s995_s13, %s991_s12 }
  0x51   : > { %1559 = sst [smem:[#allocation18_spill]] %s1558_s7  ;;  %s47_s5 = sor.u32 %s1180_s6, %s45_s4 }
  0x52   : > { %s129_s8 = sor.u32 %s74_s15, %s45_s4  ;;  %p48_p7 = scmp.eq.s32.totalorder %s47_s5, 0 }
  0x53   : > { %p130_p9 = scmp.eq.s32.totalorder %s129_s8, 0  ;;  %p149_p11 = scmp.eq.s32.totalorder %s593_s11, 11 }
  0x54   : > { %s192_s9 = sand.u32 1, %s1011_s17   ;;  %s1561_s29 = sadd.s32 1, %s1023_s20 }
  0x55   : > { %s1310_s0 = scalar_select %p48_p7, %s1023_s20, %s1561_s29  }
  0x56   : > { %s1313_s28 = scalar_select %p130_p9, %s999_s14, %s132_s2  }
  0x57   : > { %p1315_p13 = por %p149_p11, %p148_p4  ;;  %s600_s22 = sshll.u32 %s192_s9, 6 }
  0x58   : > { %s658_s21 = smul.u32 48, %s1039_s24  ;;  %p1563_p10 = scmp.lt.s32.totalorder %s1051_s27, 12 }
  0x59   : > { %s1562_s7 = scalar_select %p1315_p13, 1, 0 }
  0x5a   : > { %p1324_p0 = pnand %p1563_p10, %p1270_p5  ;;  %s202_s5 = sadd.s32 %s1043_s25, %s658_s21 }
  0x5b   : > { %s196_s8 = scalar_lea.vmem [#allocation6], %s600_s22  ;;  %s603_s15 = sshll.u32 %s202_s5, 6 }
  0x5c   : > { %s205_s11 = sshll.u32 %s196_s8, 4  ;;  %s1565_s1 = sld [smem:[#allocation21_spill]]  ;;  %s1329_s11 = int_to_ptr.vmem [resolvable:$true] %s205_s11 }
  0x5d   : > { %s1336_s3 = scalar_lea.sflag [#allocation7], %s192_s9  ;;  %p857_p1 = pneg %p1324_p0 }
  0x62   : > { %s1334_s29 = scalar_lea.hbm %s1565_s1, %s603_s15  ;;  %s860_s5 = scalar_lea.hbm %s1565_s1, 6144 }
  0x63   : > { %s855_s30 = scalar_lea.hbm %s1334_s29, 1024  ;;  %p861_p4 = scmp.lt.u32.totalorder %s1334_s29, %s1565_s1 }
  0x64   : > { %p856_p5 = scmp.ne.s32.totalorder %s1334_s29, %s855_s30  ;;  %p862_p7 = scmp.lt.u32.totalorder %s860_s5, %s855_s30 }
  0x65   : > { %p864_p11 = scmp.lt.u32.totalorder %s855_s30, %s1334_s29 }
  0x66   : > { %p858_p3 = pnand %p857_p1, %p856_p5  ;;  %p863_p9 = por %p862_p7, %p861_p4 }
  0x68   : > { %p859_p8 = pneg %p858_p3  ;;  %p865_p10 = por %p864_p11, %p863_p9 }
  0x6a   : > { %p866_p13 = pnand %p865_p10, %p859_p8 }
  0x6c   : > { %869 = shalt.err (!%p866_p13)
}
  0x6d   : > { %s870_s9 = scalar_lea.vmem %s1329_s11, 1024  ;;  %s1057_s2 = smov [#allocation6]  }
  0x6e   : > { %p871_p5 = scmp.ne.s32.totalorder %s1329_s11, %s870_s9  ;;  %s875_s4 = sshll.u32 %s1057_s2, 4  ;;  %s876_s4 = int_to_ptr.vmem [resolvable:$false] %s875_s4 }
  0x6f   : > { %s877_s22 = scalar_lea.vmem %s876_s4, 2048  ;;  %p878_p12 = scmp.lt.s32.totalorder %s1329_s11, %s876_s4 }
  0x70   : > { %p873_p3 = pnand %p871_p5, %p857_p1  ;;  %p879_p4 = scmp.lt.s32.totalorder %s877_s22, %s870_s9 }
  0x72   : > { %p874_p2 = pneg %p873_p3  ;;  %p880_p7 = por %p879_p4, %p878_p12 }
  0x74   : > { %p881_p9 = pnand %p880_p7, %p874_p2 }
  0x76   : > { %884 = shalt.err (!%p881_p9)
}
  0x77   : > { %s1058_s30 = smov 192   ;;  %s1566_s21 = smov 4  }
  0x78   : > { %s1567_s5 = smov 64   ;;  %223 = sbr.rel (%p1253_p6) target bundleno = 447 (0x1bf), region = 32 }
  0x79   : > { %672 = dma.hbm_to_vmem [thread:$0]  (!%p1324_p0), %s1334_s29, 1024, %s1329_s11, %s1336_s3, %s1058_s30, %s1567_s5, %s1566_s21  }
  0x7a   : > { %s225_s8 = sand.u32 (!%p1253_p6), 1, %s1019_s19   ;;  %p1568_p12 = scmp.ne.s32.totalorder (!%p1253_p6), %s1546_s10, 0 }
  0x7b   : > { %s1369_s15 = sshll.u32 (!%p1253_p6), %s225_s8, 4  ;;  %s226_s9 = scalar_lea.sflag (!%p1253_p6), [#allocation4], %s225_s8 }
  0x7c   : > { %s229_s2 = scalar_lea.vmem (!%p1253_p6), [#allocation3], %s1369_s15 }
  0x7f   : > { %978 = dma.done.wait (%p1568_p12), %s226_s9, 256  }
  0x80   : > { %980 = vsyncadd (%p1568_p12), %s226_s9, 4294967040  ;;  %s1569_s6 = sld [smem:[#allocation16_spill]]  ;;  %s234_s4 = sand.u32 1, %s1007_s16  }
  0x81   : > { %s606_s11 = sshll.u32 %s234_s4, 6  ;;  %s235_s29 = scalar_lea.sflag [#allocation7], %s234_s4 }
  0x82   : > { %s1377_s18 = scalar_lea.vmem [#allocation6], %s606_s11 }
  0x86   : > { %p1570_p6 = scmp.ne.s32.totalorder %s1569_s6, 0 }
  0x88   : > { %982 = dma.done.wait (%p1570_p6), %s235_s29, 1024  }
  0x89   : > { %984 = vsyncadd (%p1570_p6), %s235_s29, 4294966272  ;;  %s1571_s3 = sld [smem:[#allocation13_spill]]  ;;  %s266_s22 = sand.u32 1, %s995_s13  }
  0x8a   : > { %s607_s10 = sshll.u32 %s266_s22, 5  ;;  %s1572_s5 = sld [smem:[#allocation22_spill]] }
  0x8b   : > { %s1394_s9 = scalar_lea.vmem [#allocation8], %s607_s10  ;;  %s1573_s4 = sld [smem:[#allocation12_spill]] }
  0x8f   : > { %p271_p2 = scmp.lt.s32.totalorder %s1571_s3, 2 }
  0x91   : > { %s1614_s3 = smov (!%p271_p2, %s1571_s3), 2  ;;  %p608_p13 = scmp.ne.s32.totalorder %s1573_s4, 0 }
  0x92   : > { %s273_s8 = scalar_lea.vmem %s1572_s5, %s1614_s3  ;;  %v1059_v0 = vmov (!%p608_p13), 0.0  }
  0x93   : > { %279 = sbr.rel (%p608_p13) target bundleno = 154 (0x9a), region = 44  ;;  %280 = vst [vmem:[#allocation2] sm:$0xff] (!%p608_p13), %v1059_v0  ;;  %281 = vst [vmem:[#allocation2 + $0x8] sm:$0xff] (!%p608_p13), %v1059_v0 }
  0x94   : > { %282 = vst [vmem:[#allocation2 + $0x10] sm:$0xff] (!%p608_p13), %v1059_v0  ;;  %283 = vst [vmem:[#allocation2 + $0x18] sm:$0xff] (!%p608_p13), %v1059_v0 }
  0x9a PF: > { %v815_v1 = vld [vmem:[%s1377_s18] sm:$0xff]   ;;  %v816_v2 = vld [vmem:[%s1377_s18 + $0x8] sm:$0xff]   ;;  %v817_v3 = vld [vmem:[%s1377_s18 + $0x10] sm:$0xff]   ;;  %s1574_s15 = sld [smem:[#allocation12_spill]] }
  0x9b   : > { %638 = vmatprep.subr.bf16.mxu0 %v815_v1  ;;  %v818_v4 = vld [vmem:[%s1377_s18 + $0x18] sm:$0xff]   ;;  %v823_v5 = vld [vmem:[%s229_s2] sm:$0xff]   ;;  %v820_v7 = vld [vmem:[%s1377_s18 + $0x28] sm:$0xff]  }
  0x9c   : > { %639 = vmatpush3.bf16.msra.mxu0 %v815_v1  ;;  %654 = vmatprep.mubr.bf16.mxu0 %v823_v5  ;;  %v819_v6 = vld [vmem:[%s1377_s18 + $0x20] sm:$0xff]   ;;  %v821_v8 = vld [vmem:[%s1377_s18 + $0x30] sm:$0xff]   ;;  %v822_v9 = vld [vmem:[%s1377_s18 + $0x38] sm:$0xff]  }
  0x9d   : > { %640 = vmatprep.subr.bf16.mxu0 %v816_v2  ;;  %v824_v10 = vld [vmem:[%s229_s2 + $0x8] sm:$0xff]   ;;  %v286_v11 = vld [vmem:[#allocation2 + $0x10] sm:$0xff]  ;;  %v284_v12 = vld [vmem:[#allocation2] sm:$0xff] }
  0x9e   : > { %v287_v14 = vld [vmem:[#allocation2 + $0x18] sm:$0xff]  ;;  %v285_v17 = vld [vmem:[#allocation2 + $0x8] sm:$0xff] }
  0xa0   : > { %641 = vmatpush3.bf16.msra.mxu0 %v816_v2  ;;  %p619_p0 = scmp.ne.s32.totalorder %s1574_s15, 1 }
  0xa1   : > { %642 = vmatprep.subr.bf16.mxu0 %v817_v3  ;;  %v620_v24 = vld [vmem:[%s273_s8] ss:$0 sm:$0xff] (!%p619_p0) }
  0xa4   : > { %643 = vmatpush3.bf16.msra.mxu0 %v817_v3 }
  0xa5   : > { %644 = vmatprep.subr.bf16.mxu0 %v818_v4 }
  0xa8   : > { %645 = vmatpush3.bf16.msra.mxu0 %v818_v4 }
  0xa9   : > { %646 = vmatprep.subr.bf16.mxu0 %v819_v6 }
  0xac   : > { %647 = vmatpush3.bf16.msra.mxu0 %v819_v6 }
  0xad   : > { %648 = vmatprep.subr.bf16.mxu0 %v820_v7 }
  0xb0   : > { %649 = vmatpush3.bf16.msra.mxu0 %v820_v7 }
  0xb1   : > { %650 = vmatprep.subr.bf16.mxu0 %v821_v8 }
  0xb4   : > { %651 = vmatpush3.bf16.msra.mxu0 %v821_v8 }
  0xb5   : > { %652 = vmatprep.subr.bf16.mxu0 %v822_v9 }
  0xb8   : > { %653 = vmatpush3.bf16.msra.mxu0 %v822_v9 }
  0xbb   : > { %655 = vmatmul.mubr.bf16.vlgmr.msra.gmra.mrb[0].mxu0 %v824_v10 }
 0x18e   : > { %v656_v13 = vpop.f32.mrb[0].mxu0  ;;  %428 = sbr.rel (%p619_p0) target bundleno = 415 (0x19f), region = 48 }
 0x18f   : > { %v419_v15 = vadd.f32 %v656_v13, %v286_v11  ;;  %v402_v16 = vpop.f32.mrb[1].mxu0 }
 0x190   : > { %v417_v18 = vadd.f32 %v402_v16, %v284_v12  ;;  %v657_v19 = vpop.f32.mrb[2].mxu0 }
 0x191   : > { %423 = vst [vmem:[#allocation2 + $0x10] sm:$0xff] %v419_v15  ;;  %v420_v20 = vadd.f32 %v657_v19, %v287_v14  ;;  %v405_v21 = vpop.f32.mrb[3].mxu0 }
 0x192   : > { %421 = vst [vmem:[#allocation2] sm:$0xff] %v417_v18  ;;  %v418_v22 = vadd.f32 %v405_v21, %v285_v17 }
 0x193   : > { %424 = vst [vmem:[#allocation2 + $0x18] sm:$0xff] %v420_v20 }
 0x194   : > { %422 = vst [vmem:[#allocation2 + $0x8] sm:$0xff] %v418_v22 }
 0x198   : > { %v431_v28 = vld [vmem:[#allocation2 + $0x10] sm:$0xff] }
 0x199   : > { %v429_v23 = vld [vmem:[#allocation2] sm:$0xff]  ;;  %v442_v30 = vadd.f32 %v620_v24, %v431_v28 }
 0x19a   : > { %v440_v26 = vadd.f32 %v620_v24, %v429_v23  ;;  %v432_v29 = vld [vmem:[#allocation2 + $0x18] sm:$0xff] }
 0x19b   : > { %v430_v25 = vld [vmem:[#allocation2 + $0x8] sm:$0xff]  ;;  %v443_v31 = vadd.f32 %v620_v24, %v432_v29  ;;  %446 = vst [vmem:[%s1394_s9 + $0x10] sm:$0xff] %v442_v30 }
 0x19c   : > { %v441_v27 = vadd.f32 %v620_v24, %v430_v25  ;;  %444 = vst [vmem:[%s1394_s9] sm:$0xff] %v440_v26 }
 0x19d   : > { %447 = vst [vmem:[%s1394_s9 + $0x18] sm:$0xff] %v443_v31 }
 0x19e   : > { %445 = vst [vmem:[%s1394_s9 + $0x8] sm:$0xff] %v441_v27 }
 0x19f PF: > { %s1576_s29 = sld [smem:[#allocation14_spill]]  ;;  %s1577_s18 = sld [smem:[#allocation13_spill]] }
 0x1a0   : > { %s1578_s3 = sld [smem:[#allocation18_spill]]  ;;  %s464_s30 = sshll.u32 %s1394_s9, 4  ;;  %s1422_s30 = int_to_ptr.vmem [resolvable:$true] %s464_s30 }
 0x1a1   : > { %s1579_s15 = sld [smem:[#allocation23_spill]]  ;;  %s1431_s11 = scalar_lea.sflag [#allocation5], %s266_s22 }
 0x1a2   : > { %s885_s1 = scalar_lea.vmem %s1422_s30, 512  ;;  %s1060_s9 = smov [#allocation8]  }
 0x1a3   : > { %p886_p1 = scmp.ne.s32.totalorder %s1422_s30, %s885_s1 }
 0x1a5   : > { %s659_s10 = smul.u32 12, %s1576_s29  ;;  %s889_s29 = sshll.u32 %s1060_s9, 4  ;;  %s890_s29 = int_to_ptr.vmem [resolvable:$false] %s889_s29 }
 0x1a6   : > { %p1581_p8 = scmp.ne.s32.totalorder %s1578_s3, 0  ;;  %p892_p5 = scmp.lt.s32.totalorder %s1422_s30, %s890_s29 }
 0x1a7   : > { %s461_s21 = sadd.s32 %s1577_s18, %s659_s10  ;;  %s1580_s2 = smov %s1579_s15 }
 0x1a8   : > { %s624_s5 = sshll.u32 %s461_s21, 7  ;;  %p887_p11 = pnand %p886_p1, %p1581_p8 }
 0x1a9   : > { %s1427_s6 = scalar_lea.hbm %s1579_s15, %s624_s5  ;;  %s891_s18 = scalar_lea.vmem %s890_s29, 1024 }
 0x1aa   : > { %p888_p10 = pneg %p887_p11  ;;  %p893_p3 = scmp.lt.s32.totalorder %s891_s18, %s885_s1 }
 0x1ac   : > { %p894_p4 = por %p893_p3, %p892_p5 }
 0x1ae   : > { %p895_p7 = pnand %p894_p4, %p888_p10 }
 0x1b0   : > { %898 = shalt.err (!%p895_p7)
}
 0x1b1   : > { %s899_s22 = scalar_lea.hbm %s1427_s6, 512  ;;  %s903_s5 = scalar_lea.hbm %s1580_s2, 3072 }
 0x1b2   : > { %p900_p9 = scmp.ne.s32.totalorder %s1427_s6, %s899_s22  ;;  %p904_p2 = scmp.lt.u32.totalorder %s1427_s6, %s1580_s2 }
 0x1b3   : > { %p905_p13 = scmp.lt.u32.totalorder %s903_s5, %s899_s22  ;;  %p907_p1 = scmp.lt.u32.totalorder %s899_s22, %s1427_s6 }
 0x1b4   : > { %p901_p12 = pnand %p900_p9, %p1581_p8 }
 0x1b5   : > { %p906_p0 = por %p905_p13, %p904_p2 }
 0x1b6   : > { %p902_p6 = pneg %p901_p12 }
 0x1b7   : > { %p908_p11 = por %p907_p1, %p906_p0 }
 0x1b9   : > { %p909_p10 = pnand %p908_p11, %p902_p6 }
 0x1bb   : > { %912 = shalt.err (!%p909_p10)
}
 0x1bc   : > { %s1061_s1 = smov 128   ;;  %s1062_s15 = smov 384  }
 0x1bd   : > { %s1063_s9 = smov 8  }
 0x1be   : > { %664 = dma.vmem_to_hbm [thread:$0]  (%p1581_p8), %s1422_s30, 512, %s1427_s6, %s1431_s11, %s1061_s1, %s1062_s15, %s1063_s9  }
 0x1bf PF: > { %p678_p5 = scmp.ge.s32.totalorder %s1051_s27, 2  ;;  %s479_s29 = sand.u32 1, %s991_s12  }
 0x1c0   : > { %p1582_p3 = scmp.ne.s32.totalorder %s1562_s7, 0  ;;  %s480_s18 = scalar_lea.sflag [#allocation5], %s479_s29 }
 0x1c2   : > { %p674_p4 = pnand %p678_p5, %p1582_p3 }
 0x1c4   : > { %986 = dma.done.wait (!%p674_p4), %s480_s18, 512  }
 0x1c5   : > { %988 = vsyncadd (!%p674_p4), %s480_s18, 4294966784  ;;  %s22_s27 = sadd.s32 1, %s1051_s27   ;;  %s1584_s7 = sld [smem:[#allocation15_spill]] }
 0x1c6   : > { %p1460_p7 = scmp.ge.s32.totalorder %s22_s27, 14   ;;  %s1585_s3 = sld [smem:[#allocation17_spill]] }
 0x1c7   : > { %s1586_s30 = sld [smem:[#allocation19_spill]]  ;;  %s1587_s12 = smov %s995_s13 }
 0x1c8   : > { %s1589_s13 = smov %s999_s14  ;;  %s1590_s14 = smov %s1313_s28 }
 0x1c9   : > { %s1591_s15 = smov %s1007_s16  ;;  %s1592_s16 = smov %s1011_s17 }
 0x1ca   : > { %s1593_s17 = smov %s1299_s23  ;;  %s1594_s18 = smov %s1019_s19 }
 0x1cb   : > { %s1595_s19 = smov %s1023_s20  ;;  %s1596_s20 = smov %s1310_s0 }
 0x1cc   : > { %s1597_s21 = smov %s1039_s24  ;;  %s1598_s22 = smov %s1043_s25 }
 0x1cd   : > { %s1599_s23 = smov %s1047_s26  ;;  %s1600_s24 = smov %s1584_s7 }
 0x1ce   : > { %s1601_s25 = smov %s1585_s3  ;;  %s1602_s26 = smov %s1586_s30 }
 0x1cf   :  { %21 = sbr.rel (!%p1460_p7) target bundleno = 18 (0x12), region = 101 }
 0x1d6   :  { %485 = vsyncpa [#allocation4], 1 }
 0x1d7   :  { %487 = vsyncpa [#allocation4 + $0x1], 1 }
 0x1d8   :  { %488 = vsyncpa [#allocation7], 1 }
 0x1d9   :  { %490 = vsyncpa [#allocation7 + $0x1], 1 }
 0x1da   :  { %491 = vsyncpa [#allocation5], 1 }
 0x1db   :  { %493 = vsyncpa [#allocation5 + $0x1], 1 }

</bundles_post_ra>
